<compile_context>
chip_gen: v7x
topology: tpu7x:2x2x1
jax: 0.10.0
libtpu: 0.0.40
codegen_flags: <defaults>
</compile_context>

<pallas_src>
import jax
import jax.numpy as jnp
import numpy as np
from jax.experimental import pallas as pl
from jax.experimental.pallas import tpu as pltpu


def _round_up(a, b):
    return ((a + b - 1) // b) * b


def _ltangent_kernel(x_ref, yt_ref, ynorm_ref, omf_ref, yomf_ref, lamf_ref,
                     sel_ref, out_ref):
    """Per grid step (n-tile, prototype-block):

      x_ref     (TN, D)     f32   input tile (resident across the k axis)
      yt_ref    (D, BK)     bf16  prototype block, pre-transposed (no in-kernel .T)
      ynorm_ref (1, BK)     f32   ||y_k||^2
      omf_ref   (D, BK*S)   bf16  rotated bases Omega'_k = Omega_k U_k, flattened k-major
      yomf_ref  (1, BK*S)   f32   y_k @ Omega'_k, flattened
      lamf_ref  (1, BK*S)   f32   eigenvalues of (G_k - 2I), flattened
      sel_ref   (BK*S, BK)  bf16  group-sum selector (sum over S per prototype)
      out_ref   (TN, BK)    f32   lane-dense output slab
    """
    x = x_ref[...]
    xb = x.astype(jnp.bfloat16)                                   # bf16 MXU operands
    xnorm = jnp.sum(x * x, axis=1, keepdims=True)                 # (TN, 1) f32 VPU

    # Two deep (K = D) lane-dense MXU matmuls, f32 accumulate.
    xy = jnp.dot(xb, yt_ref[...], preferred_element_type=jnp.float32)   # (TN, BK)
    t = yomf_ref[...] - jnp.dot(xb, omf_ref[...],
                                preferred_element_type=jnp.float32)     # (TN, BK*S)

    # Weighted squared tangent coordinates; group-sum over S via a third MXU
    # matmul (avoids any (TN, BK, S) relayout or tiny batched S-wide matmuls).
    w = (lamf_ref[...] * t * t).astype(jnp.bfloat16)
    corr = jnp.dot(w, sel_ref[...], preferred_element_type=jnp.float32)  # (TN, BK)

    d2 = xnorm + ynorm_ref[...] - 2.0 * xy + corr
    out_ref[...] = jnp.maximum(d2, 0.0).astype(out_ref.dtype)


def ltangent_distance_pallas(x, y, omegas, *, tn=256, bk=128):
    """x: (N, ...), y: (P, D), omegas: (P, D, S)  ->  (N, P) squared distances."""
    N = x.shape[0]
    x2 = x.reshape(N, -1).astype(jnp.float32)
    P, D, S = omegas.shape
    y2 = y.reshape(y.shape[0], -1).astype(jnp.float32)
    assert x2.shape[1] == D and y2.shape == (P, D)
    om = omegas.astype(jnp.float32)

    # ---- cheap per-prototype precompute, once in XLA: O(P*(D*S + S^2)) ----
    # ||v (I - Om Om^T)||^2 = ||v||^2 + t (G - 2I) t^T,  t = v Om,  G = Om^T Om.
    gram = jnp.einsum("kds,kdt->kst", om, om)                         # (P, S, S)
    lam, u = jnp.linalg.eigh(gram - 2.0 * jnp.eye(S, dtype=jnp.float32))
    om_rot = jnp.einsum("kds,kst->kdt", om, u)                        # (P, D, S)
    yom = jnp.einsum("kd,kds->ks", y2, om_rot)                        # (P, S)
    ynorm = jnp.sum(y2 * y2, axis=1)                                  # (P,)

    # ---- padding: lane-dense prototype blocks (mult. of 128), sublane-dense N ----
    BK = bk
    P_pad = _round_up(P, BK)
    TN = min(tn, _round_up(N, 8))
    N_pad = _round_up(N, TN)

    xp = jnp.zeros((N_pad, D), jnp.float32).at[:N].set(x2)
    yt = (jnp.zeros((D, P_pad), jnp.float32).at[:, :P].set(y2.T)
          .astype(jnp.bfloat16))
    ynormp = jnp.zeros((1, P_pad), jnp.float32).at[0, :P].set(ynorm)
    omf = (jnp.zeros((D, P_pad, S), jnp.float32)
           .at[:, :P, :].set(jnp.transpose(om_rot, (1, 0, 2)))
           .reshape(D, P_pad * S).astype(jnp.bfloat16))
    yomf = jnp.zeros((P_pad, S), jnp.float32).at[:P].set(yom).reshape(1, P_pad * S)
    lamf = jnp.zeros((P_pad, S), jnp.float32).at[:P].set(lam).reshape(1, P_pad * S)
    sel = jnp.repeat(jnp.eye(BK, dtype=jnp.float32), S, axis=0).astype(jnp.bfloat16)

    grid = (N_pad // TN, P_pad // BK)

    # Per-step working set is ~1.5 MiB (x tile + bf16 omega/y blocks + selector
    # + flat intermediates), well under the 32 MiB scoped-VMEM default on all
    # generations, so no vmem_limit_bytes override is needed.
    out = pl.pallas_call(
        _ltangent_kernel,
        out_shape=jax.ShapeDtypeStruct((N_pad, P_pad), jnp.float32),
        grid=grid,
        in_specs=[
            pl.BlockSpec((TN, D), lambda n, k: (n, 0)),        # x tile (resident over k)
            pl.BlockSpec((D, BK), lambda n, k: (0, k)),        # y^T block
            pl.BlockSpec((1, BK), lambda n, k: (0, k)),        # ||y||^2
            pl.BlockSpec((D, BK * S), lambda n, k: (0, k)),    # Omega' block (flattened)
            pl.BlockSpec((1, BK * S), lambda n, k: (0, k)),    # y @ Omega'
            pl.BlockSpec((1, BK * S), lambda n, k: (0, k)),    # eigenvalues of (G - 2I)
            pl.BlockSpec((BK * S, BK), lambda n, k: (0, 0)),   # group-sum selector (resident)
        ],
        out_specs=pl.BlockSpec((TN, BK), lambda n, k: (n, k)),
        compiler_params=pltpu.CompilerParams(
            dimension_semantics=("parallel", "parallel")),     # disjoint output blocks
    )(xp, yt, ynormp, omf, yomf, lamf, sel)

    return out[:N, :P]


def ltangent_distance_ref(x, y, omegas):
    """Pure-JAX reference mirroring the PyTorch ltangent_distance."""
    hp = jax.lax.Precision.HIGHEST
    N = x.shape[0]
    x2 = x.reshape(N, -1)
    y2 = y.reshape(y.shape[0], -1)
    D = omegas.shape[-2]
    p = jnp.eye(D, dtype=jnp.float32) - jnp.einsum("kds,kes->kde", omegas, omegas,
                                                   precision=hp)
    proj_x = jnp.einsum("nd,kde->kne", x2, p, precision=hp)       # (P, N, D)
    proj_y = jnp.einsum("kd,kde->ke", y2, p, precision=hp)        # (P, D)
    diff = proj_y[:, None, :] - proj_x                            # (P, N, D)
    return jnp.sum(diff * diff, axis=2).T                         # (N, P)


class SiameseTangentLayer:
    """JAX/Pallas counterpart of the PyTorch SiameseTangentLayer."""

    def __init__(self, num_classes, num_protos, feat_dim=None, dim=None):
        self.nall = num_protos * num_classes
        self.num_protos, self.num_classes = num_protos, num_classes
        self.feat_dim, self.subdim = feat_dim, dim
        self.subspaces = None
        self.protos = None
        self.plabels = None

    def init(self, key, siaprotos, labels=None):
        # TODO(synk): data-driven SVD subspace init / orthogonalize_subspace are
        # init-time host ops (torch.linalg.svd), not part of forward(); a
        # deterministic random init stands in here.
        self.subspaces = jax.random.normal(
            key, (self.nall, self.feat_dim, self.subdim), jnp.float32
        ) / jnp.sqrt(jnp.float32(self.feat_dim))
        self.protos = siaprotos
        self.plabels = labels

    def __call__(self, x, y, omegas):
        return ltangent_distance_pallas(x, y, omegas)


if __name__ == "__main__":
    num_classes, num_protos, subdim = 3, 2, 8
    N, C, H, W = 2, 4, 8, 8
    D = C * H * W                     # feat_dim = 256
    P = num_classes * num_protos      # nall = 6

    key = jax.random.PRNGKey(0)
    kx, ky, ko = jax.random.split(key, 3)
    x = jax.random.normal(kx, (N, C, H, W), jnp.float32)
    protos = jax.random.normal(ky, (P, D), jnp.float32)

    layer = SiameseTangentLayer(num_classes, num_protos, feat_dim=D, dim=subdim)
    layer.init(ko, protos)
    omegas = layer.subspaces          # (P, D, S)

    out = layer(x, layer.protos, omegas)
    out = jax.block_until_ready(out)

    assert out.shape == (N, P), out.shape
    ref = ltangent_distance_ref(
        x.astype(jnp.float32), protos.astype(jnp.float32), omegas
    )
    # bf16 MXU operands + Gram expansion -> relax tolerance (values are O(500)).
    np.testing.assert_allclose(np.asarray(out), np.asarray(ref), rtol=5e-3, atol=5e-2)
    print("KERNEL_OK")
</pallas_src>

<mosaic_0001>
module attributes {stable_mosaic.version = 11 : i64} {
  func.func @_ltangent_kernel(%arg0: i32, %arg1: i32, %arg2: memref<8x256xf32, #tpu.memory_space<vmem>>, %arg3: memref<256x128xbf16, #tpu.memory_space<vmem>>, %arg4: memref<1x128xf32, #tpu.memory_space<vmem>>, %arg5: memref<256x1024xbf16, #tpu.memory_space<vmem>>, %arg6: memref<1x1024xf32, #tpu.memory_space<vmem>>, %arg7: memref<1x1024xf32, #tpu.memory_space<vmem>>, %arg8: memref<1024x128xbf16, #tpu.memory_space<vmem>>, %arg9: memref<8x128xf32, #tpu.memory_space<vmem>>) attributes {dimension_semantics = [#tpu.dimension_semantics<parallel>, #tpu.dimension_semantics<parallel>], iteration_bounds = array<i64: 1, 1>, scalar_prefetch = 0 : i64, scratch_operands = 0 : i64, tpu.core_type = #tpu.core_type<tc>, window_params = [{transform_indices = @transform_0, window_bounds = array<i64: 8, 256>}, {transform_indices = @transform_1, window_bounds = array<i64: 256, 128>}, {transform_indices = @transform_2, window_bounds = array<i64: 1, 128>}, {transform_indices = @transform_3, window_bounds = array<i64: 256, 1024>}, {transform_indices = @transform_4, window_bounds = array<i64: 1, 1024>}, {transform_indices = @transform_5, window_bounds = array<i64: 1, 1024>}, {pipeline_mode = #tpu.pipeline_mode<synchronous>, transform_indices = @transform_6, window_bounds = array<i64: 1024, 128>}, {transform_indices = @transform_7, window_bounds = array<i64: 8, 128>}]} {
    %c0 = arith.constant 0 : index
    %c0_0 = arith.constant 0 : index
    %0 = vector.load %arg2[%c0, %c0_0] : memref<8x256xf32, #tpu.memory_space<vmem>>, vector<8x256xf32>
    %1 = arith.truncf %0 : vector<8x256xf32> to vector<8x256xbf16>
    %2 = arith.mulf %0, %0 : vector<8x256xf32>
    %cst = arith.constant dense<0.000000e+00> : vector<8xf32>
    %3 = vector.multi_reduction <add>, %2, %cst [1] : vector<8x256xf32> to vector<8xf32>
    %4 = vector.shape_cast %3 : vector<8xf32> to vector<8x1xf32>
    %c0_1 = arith.constant 0 : index
    %c0_2 = arith.constant 0 : index
    %5 = vector.load %arg3[%c0_1, %c0_2] : memref<256x128xbf16, #tpu.memory_space<vmem>>, vector<256x128xbf16>
    %cst_3 = arith.constant dense<0.000000e+00> : vector<8x128xf32>
    %6 = tpu.matmul %1, %5, %cst_3 {dimension_numbers = #tpu.dot_dimension_numbers<[1], [0], [0], [1], [0, 0, 1, 1], [], []>} : vector<8x256xbf16>, vector<256x128xbf16>, vector<8x128xf32> -> vector<8x128xf32>
    %c0_4 = arith.constant 0 : index
    %c0_5 = arith.constant 0 : index
    %7 = vector.load %arg6[%c0_4, %c0_5] : memref<1x1024xf32, #tpu.memory_space<vmem>>, vector<1x1024xf32>
    %c0_6 = arith.constant 0 : index
    %c0_7 = arith.constant 0 : index
    %8 = vector.load %arg5[%c0_6, %c0_7] : memref<256x1024xbf16, #tpu.memory_space<vmem>>, vector<256x1024xbf16>
    %cst_8 = arith.constant dense<0.000000e+00> : vector<8x1024xf32>
    %9 = tpu.matmul %1, %8, %cst_8 {dimension_numbers = #tpu.dot_dimension_numbers<[1], [0], [0], [1], [0, 0, 1, 1], [], []>} : vector<8x256xbf16>, vector<256x1024xbf16>, vector<8x1024xf32> -> vector<8x1024xf32>
    %10 = vector.broadcast %7 : vector<1x1024xf32> to vector<8x1024xf32>
    %11 = arith.subf %10, %9 : vector<8x1024xf32>
    %c0_9 = arith.constant 0 : index
    %c0_10 = arith.constant 0 : index
    %12 = vector.load %arg7[%c0_9, %c0_10] : memref<1x1024xf32, #tpu.memory_space<vmem>>, vector<1x1024xf32>
    %13 = vector.broadcast %12 : vector<1x1024xf32> to vector<8x1024xf32>
    %14 = arith.mulf %13, %11 : vector<8x1024xf32>
    %15 = arith.mulf %14, %11 : vector<8x1024xf32>
    %16 = arith.truncf %15 : vector<8x1024xf32> to vector<8x1024xbf16>
    %c0_11 = arith.constant 0 : index
    %c0_12 = arith.constant 0 : index
    %17 = vector.load %arg8[%c0_11, %c0_12] : memref<1024x128xbf16, #tpu.memory_space<vmem>>, vector<1024x128xbf16>
    %cst_13 = arith.constant dense<0.000000e+00> : vector<8x128xf32>
    %18 = tpu.matmul %16, %17, %cst_13 {dimension_numbers = #tpu.dot_dimension_numbers<[1], [0], [0], [1], [0, 0, 1, 1], [], []>} : vector<8x1024xbf16>, vector<1024x128xbf16>, vector<8x128xf32> -> vector<8x128xf32>
    %c0_14 = arith.constant 0 : index
    %c0_15 = arith.constant 0 : index
    %19 = vector.load %arg4[%c0_14, %c0_15] : memref<1x128xf32, #tpu.memory_space<vmem>>, vector<1x128xf32>
    %20 = vector.broadcast %4 : vector<8x1xf32> to vector<8x128xf32>
    %21 = vector.broadcast %19 : vector<1x128xf32> to vector<8x128xf32>
    %22 = arith.addf %20, %21 : vector<8x128xf32>
    %cst_16 = arith.constant 2.000000e+00 : f32
    %23 = vector.broadcast %cst_16 : f32 to vector<8x128xf32>
    %24 = arith.mulf %23, %6 : vector<8x128xf32>
    %25 = arith.subf %22, %24 : vector<8x128xf32>
    %26 = arith.addf %25, %18 : vector<8x128xf32>
    %cst_17 = arith.constant 0.000000e+00 : f32
    %27 = vector.broadcast %cst_17 : f32 to vector<8x128xf32>
    %28 = arith.maximumf %26, %27 : vector<8x128xf32>
    %c0_18 = arith.constant 0 : index
    %c0_19 = arith.constant 0 : index
    %29 = vector.load %arg9[%c0_18, %c0_19] : memref<8x128xf32, #tpu.memory_space<vmem>>, vector<8x128xf32>
    tpu.vector_store %arg9[%c0_18, %c0_19], %28 {strides = array<i32>} : memref<8x128xf32, #tpu.memory_space<vmem>>, vector<8x128xf32>,
    return
  }
  func.func @transform_0(%arg0: i32, %arg1: i32) -> (i32, i32) {
    %c0_i32 = arith.constant 0 : i32
    %c0_i32_0 = arith.constant 0 : i32
    return %arg0, %c0_i32 : i32, i32
  }
  func.func @transform_1(%arg0: i32, %arg1: i32) -> (i32, i32) {
    %c0_i32 = arith.constant 0 : i32
    %c0_i32_0 = arith.constant 0 : i32
    return %c0_i32, %arg1 : i32, i32
  }
  func.func @transform_2(%arg0: i32, %arg1: i32) -> (i32, i32) {
    %c0_i32 = arith.constant 0 : i32
    %c0_i32_0 = arith.constant 0 : i32
    return %c0_i32, %arg1 : i32, i32
  }
  func.func @transform_3(%arg0: i32, %arg1: i32) -> (i32, i32) {
    %c0_i32 = arith.constant 0 : i32
    %c0_i32_0 = arith.constant 0 : i32
    return %c0_i32, %arg1 : i32, i32
  }
  func.func @transform_4(%arg0: i32, %arg1: i32) -> (i32, i32) {
    %c0_i32 = arith.constant 0 : i32
    %c0_i32_0 = arith.constant 0 : i32
    return %c0_i32, %arg1 : i32, i32
  }
  func.func @transform_5(%arg0: i32, %arg1: i32) -> (i32, i32) {
    %c0_i32 = arith.constant 0 : i32
    %c0_i32_0 = arith.constant 0 : i32
    return %c0_i32, %arg1 : i32, i32
  }
  func.func @transform_6(%arg0: i32, %arg1: i32) -> (i32, i32) {
    %c0_i32 = arith.constant 0 : i32
    %c0_i32_0 = arith.constant 0 : i32
    %c0_i32_1 = arith.constant 0 : i32
    return %c0_i32, %c0_i32_0 : i32, i32
  }
  func.func @transform_7(%arg0: i32, %arg1: i32) -> (i32, i32) {
    %c0_i32 = arith.constant 0 : i32
    return %arg0, %arg1 : i32, i32
  }
}

</mosaic_0001>

<bundles_post_ra>
// kernel: tpu_custom_call.1
= control target key start
LH: loop header
LB: loop body
LE: loop exit
PB: predicated region body
PF: predicated region fallthrough
CT: control target
= control target key end

     0   :  { %12 = vsyncpa [#allocation3], 0  ;;  %s2705_s0 = inlined_call_operand.hbm [shape: f32[8,256], index: 0, kind: input, shape index: {}]   ;;  %s2706_s1 = inlined_call_operand.hbm [shape: bf16[256,128], index: 1, kind: input, shape index: {}]   ;;  %s2707_s2 = inlined_call_operand.vmem [shape: f32[1,128], index: 2, kind: input, shape index: {}]   ;;  %s2708_s3 = inlined_call_operand.hbm [shape: bf16[256,1024], index: 3, kind: input, shape index: {}]   ;;  %s2709_s4 = inlined_call_operand.vmem [shape: f32[1,1024], index: 4, kind: input, shape index: {}]   ;;  %s2710_s5 = inlined_call_operand.vmem [shape: f32[1,1024], index: 5, kind: input, shape index: {}]   ;;  %s2711_s6 = inlined_call_operand.hbm [shape: bf16[1024,128], index: 6, kind: input, shape index: {}]   ;;  %s2712_s7 = inlined_call_operand.hbm [shape: f32[8,128], index: 7, kind: output, shape index: {}]  }
   0x1   :  { %13 = vsyncpa [#allocation6], 0 }
   0x2   :  { %14 = vsyncpa [#allocation9], 0 }
   0x3   :  { %15 = vsyncpa [#allocation4], 0  ;;  %s2534_s24 = smov [#allocation5]   ;;  %s2416_s28 = scalar_lea.hbm %s2706_s1, 2048 }
   0x4   :  { %s31_s25 = sshll.u32 %s2534_s24, 4  ;;  %p2417_p0 = scmp.ne.s32.totalorder %s2706_s1, %s2416_s28  ;;  %s32_s25 = int_to_ptr.vmem [resolvable:$true] %s31_s25 }
   0x5   :  { %p2420_p1 = scmp.lt.u32.totalorder %s2416_s28, %s2706_s1 }
   0x7   :  { %p2422_p2 = pnand %p2420_p1, %p2417_p0 }
   0x9   :  { %2425 = shalt.err (!%p2422_p2)
}
   0xa   :  { %s2426_s10 = scalar_lea.vmem %s32_s25, 2048  ;;  %p2431_p4 = scmp.lt.s32.totalorder %s32_s25, %s32_s25 }
   0xb   :  { %p2427_p3 = scmp.ne.s32.totalorder %s32_s25, %s2426_s10  ;;  %p2432_p5 = scmp.lt.s32.totalorder %s2426_s10, %s2426_s10 }
   0xd   :  { %p2433_p6 = por %p2432_p5, %p2431_p4 }
   0xf   :  { %p2434_p7 = pnand %p2433_p6, %p2427_p3 }
  0x11   :  { %2437 = shalt.err (!%p2434_p7)
}
  0x12   :  { %s2535_s11 = smov 64   ;;  %s2536_s12 = smov 4  }
  0x13   :  { %37 = dma.hbm_to_vmem [thread:$0]  %s2706_s1, 2048, %s32_s25, [#allocation6], %s2535_s11, %s2535_s11, %s2536_s12  }
  0x14   :  { %s2537_s15 = smov [#allocation2]   ;;  %s2538_s17 = smov [#allocation7]  }
  0x15   :  { %s22_s16 = sshll.u32 %s2537_s15, 4  ;;  %s45_s18 = sshll.u32 %s2538_s17, 4  ;;  %s23_s16 = int_to_ptr.vmem [resolvable:$true] %s22_s16  ;;  %s46_s18 = int_to_ptr.vmem [resolvable:$true] %s45_s18 }
  0x16   :  { %s2438_s21 = scalar_lea.hbm %s2705_s0, 256 }
  0x17   :  { %p2439_p8 = scmp.ne.s32.totalorder %s2705_s0, %s2438_s21  ;;  %p2442_p9 = scmp.lt.u32.totalorder %s2438_s21, %s2705_s0 }
  0x19   :  { %p2444_p10 = pnand %p2442_p9, %p2439_p8 }
  0x1b   :  { %2447 = shalt.err (!%p2444_p10)
}
  0x1c   :  { %s2448_s1 = scalar_lea.vmem %s23_s16, 256  ;;  %p2453_p12 = scmp.lt.s32.totalorder %s23_s16, %s23_s16 }
  0x1d   :  { %p2449_p11 = scmp.ne.s32.totalorder %s23_s16, %s2448_s1  ;;  %p2454_p13 = scmp.lt.s32.totalorder %s2448_s1, %s2448_s1 }
  0x1f   :  { %p2455_p0 = por %p2454_p13, %p2453_p12 }
  0x21   :  { %p2456_p1 = pnand %p2455_p0, %p2449_p11 }
  0x23   :  { %2459 = shalt.err (!%p2456_p1)
}
  0x24   :  { %25 = dma.hbm_to_vmem [thread:$0]  %s2705_s0, 256, %s23_s16, [#allocation3]  }
  0x25   :  { %s2460_s30 = scalar_lea.hbm %s2708_s3, 16384 }
  0x26   :  { %p2461_p2 = scmp.ne.s32.totalorder %s2708_s3, %s2460_s30  ;;  %p2464_p3 = scmp.lt.u32.totalorder %s2460_s30, %s2708_s3 }
  0x28   :  { %p2466_p4 = pnand %p2464_p3, %p2461_p2 }
  0x2a   :  { %2469 = shalt.err (!%p2466_p4)
}
  0x2b   :  { %s2470_s14 = scalar_lea.vmem %s46_s18, 16384  ;;  %p2475_p6 = scmp.lt.s32.totalorder %s46_s18, %s46_s18 }
  0x2c   :  { %p2471_p5 = scmp.ne.s32.totalorder %s46_s18, %s2470_s14  ;;  %p2476_p7 = scmp.lt.s32.totalorder %s2470_s14, %s2470_s14 }
  0x2e   :  { %p2477_p8 = por %p2476_p7, %p2475_p6 }
  0x30   :  { %p2478_p9 = pnand %p2477_p8, %p2471_p5 }
  0x32   :  { %2481 = shalt.err (!%p2478_p9)
}
  0x33   :  { %s2539_s0 = smov 512   ;;  %s2540_s15 = smov 32  }
  0x34   :  { %51 = dma.hbm_to_vmem [thread:$0]  %s2708_s3, 16384, %s46_s18, [#allocation6], %s2539_s0, %s2539_s0, %s2540_s15  }
  0x35   :  { %s2541_s19 = smov [#allocation8]   ;;  %s2482_s23 = scalar_lea.hbm %s2711_s6, 8192 }
  0x36   :  { %s61_s20 = sshll.u32 %s2541_s19, 4  ;;  %p2483_p10 = scmp.ne.s32.totalorder %s2711_s6, %s2482_s23  ;;  %s62_s20 = int_to_ptr.vmem [resolvable:$true] %s61_s20 }
  0x37   :  { %p2486_p11 = scmp.lt.u32.totalorder %s2482_s23, %s2711_s6 }
  0x39   :  { %p2488_p12 = pnand %p2486_p11, %p2483_p10 }
  0x3b   :  { %2491 = shalt.err (!%p2488_p12)
}
  0x3c   :  { %s2492_s27 = scalar_lea.vmem %s62_s20, 8192  ;;  %p2497_p0 = scmp.lt.s32.totalorder %s62_s20, %s62_s20 }
  0x3d   :  { %p2493_p13 = scmp.ne.s32.totalorder %s62_s20, %s2492_s27  ;;  %p2498_p1 = scmp.lt.s32.totalorder %s2492_s27, %s2492_s27 }
  0x3f   :  { %p2499_p2 = por %p2498_p1, %p2497_p0 }
  0x41   :  { %p2500_p3 = pnand %p2499_p2, %p2493_p13 }
  0x43   :  { %2503 = shalt.err (!%p2500_p3)
}
  0x44   :  { %67 = dma.hbm_to_vmem [thread:$0]  %s2711_s6, 8192, %s62_s20, [#allocation9], %s2535_s11, %s2535_s11, %s2536_s12  }
  0x45   :  { %2526 = dma.done.wait [#allocation3], 256  }
  0x46   :  { %2527 = vsyncadd [#allocation3], 4294967040 }
  0x47   :  { %2528 = dma.done.wait [#allocation6], 18432  }
  0x48   :  { %2529 = vsyncadd [#allocation6], 4294948864 }
  0x49   :  { %2530 = dma.done.wait [#allocation9], 8192  }
  0x4a   :  { %2531 = vsyncadd [#allocation9], 4294959104  ;;  %v2336_v0 = vld [vmem:[#allocation5 + $0x40] sm:$0xff]   ;;  %v2338_v6 = vld [vmem:[#allocation5 + $0x48] sm:$0xff]   ;;  %s2542_s29 = smov [#allocation10]  }
  0x4b   :  { %v259_v1 = vld [vmem:[#allocation7] sm:$0xff]  ;;  %2217 = vmatprep.subr.bf16.mxu0 %v2336_v0  ;;  %v2339_v10 = vld [vmem:[#allocation5 + $0x8] sm:$0xff]   ;;  %v2340_v12 = vld [vmem:[#allocation5 + $0x50] sm:$0xff]   ;;  %s1997_s30 = sshll.u32 %s2542_s29, 4  ;;  %s1998_s30 = int_to_ptr.vmem [resolvable:$true] %s1997_s30 }
  0x4c   :  { %v263_v2 = vld [vmem:[#allocation7 + $0x20] sm:$0xff]  ;;  %v2341_v16 = vld [vmem:[#allocation5 + $0x10] sm:$0xff]   ;;  %v2342_v17 = vld [vmem:[#allocation5 + $0x58] sm:$0xff]   ;;  %s2504_s8 = scalar_lea.vmem %s1998_s30, 128  ;;  %p2509_p5 = scmp.lt.s32.totalorder %s1998_s30, %s1998_s30 }
  0x4d   :  { %v2025_v3 = vcombine.high %v259_v1, %v263_v2  ;;  %v2337_v4 = vld [vmem:[#allocation5] sm:$0xff]   ;;  %v2024_v5 = vcombine.low %v259_v1, %v263_v2  ;;  %v2343_v22 = vld [vmem:[#allocation5 + $0x18] sm:$0xff]   ;;  %v2346_v32 = vld [vmem:[#allocation5 + $0x68] sm:$0xff]   ;;  %p2505_p4 = scmp.ne.s32.totalorder %s1998_s30, %s2504_s8  ;;  %p2510_p6 = scmp.lt.s32.totalorder %s2504_s8, %s2504_s8 }
  0x4e   :  { %v267_v7 = vld [vmem:[#allocation7 + $0x40] sm:$0xff]  ;;  %2218 = vmatpush3.bf16.msra.mxu0 %v2337_v4  ;;  %v2347_v36 = vld [vmem:[#allocation5 + $0x28] sm:$0xff]   ;;  %v2348_v38 = vld [vmem:[#allocation5 + $0x70] sm:$0xff]  }
  0x4f   :  { %1027 = vmatprep.subr.bf16.mxu1 %v2025_v3  ;;  %v271_v8 = vld [vmem:[#allocation7 + $0x60] sm:$0xff]  ;;  %2219 = vmatprep.subr.bf16.mxu0 %v2338_v6  ;;  %v82_v39 = vld [vmem:[#allocation2 + $0x8] sm:$0xff]  ;;  %v81_v42 = vld [vmem:[#allocation2] sm:$0xff]  ;;  %p2511_p7 = por %p2510_p6, %p2509_p5 }
  0x50   :  { %1028 = vmatpush1.bf16.msra.mxu1 %v2024_v5  ;;  %v2033_v9 = vcombine.high %v267_v7, %v271_v8  ;;  %v2032_v11 = vcombine.low %v267_v7, %v271_v8  ;;  %v275_v13 = vld [vmem:[#allocation7 + $0x80] sm:$0xff]  ;;  %v2637_v41 = vpack.c.bf16 %v82_v39, %v82_v39  ;;  %v85_v45 = vmul.f32 %v81_v42, %v81_v42  ;;  %v2349_v47 = vld [vmem:[#allocation5 + $0x30] sm:$0xff]   ;;  %v2350_v49 = vld [vmem:[#allocation5 + $0x78] sm:$0xff]  }
  0x51   :  { %v279_v14 = vld [vmem:[#allocation7 + $0xa0] sm:$0xff]  ;;  %v86_v46 = vmul.f32 %v82_v39, %v82_v39  ;;  %v260_v51 = vld [vmem:[#allocation7 + $0x8] sm:$0xff]  ;;  %v2351_v56 = vld [vmem:[#allocation5 + $0x38] sm:$0xff]   ;;  %v2641_v62 = vpack.c.bf16 %v81_v42, %v81_v42  ;;  %p2512_p8 = pnand %p2511_p7, %p2505_p4 }
  0x52   :  { %1029 = vmatprep.subr.bf16.mxu1 %v2033_v9  ;;  %v2041_v15 = vcombine.high %v275_v13, %v279_v14  ;;  %2220 = vmatpush3.bf16.msra.mxu0 %v2339_v10  ;;  %v2040_v18 = vcombine.low %v275_v13, %v279_v14  ;;  %v283_v19 = vld [vmem:[#allocation7 + $0xc0] sm:$0xff]  ;;  %v264_v52 = vld [vmem:[#allocation7 + $0x28] sm:$0xff] }
  0x53   :  { %2221 = vmatprep.subr.bf16.mxu0 %v2340_v12  ;;  %v287_v20 = vld [vmem:[#allocation7 + $0xe0] sm:$0xff]  ;;  %250 = vmatprep.mubr.bf16.mxu0 %v2637_v41  ;;  %v87_v55 = vadd.f32 %v86_v46, %v85_v45  ;;  %v2027_v58 = vcombine.high %v260_v51, %v264_v52  ;;  %v268_v60 = vld [vmem:[#allocation7 + $0x48] sm:$0xff]  ;;  %v2026_v1 = vcombine.low %v260_v51, %v264_v52 }
  0x54   :  { %1030 = vmatpush1.bf16.msra.mxu1 %v2032_v11  ;;  %v2049_v21 = vcombine.high %v283_v19, %v287_v20  ;;  %v291_v23 = vld [vmem:[#allocation7 + $0x100] sm:$0xff]  ;;  %v2048_v25 = vcombine.low %v283_v19, %v287_v20  ;;  %1059 = vmatprep.mubr.bf16.mxu1 %v2637_v41  ;;  %v272_v61 = vld [vmem:[#allocation7 + $0x68] sm:$0xff] }
  0x55   :  { %1031 = vmatprep.subr.bf16.mxu1 %v2041_v15  ;;  %v295_v24 = vld [vmem:[#allocation7 + $0x120] sm:$0xff]  ;;  %88 = vadd.xlane.f32.xlu0 %v87_v55  ;;  %v2035_v3 = vcombine.high %v268_v60, %v272_v61  ;;  %v276_v5 = vld [vmem:[#allocation7 + $0x88] sm:$0xff]  ;;  %v2034_v9 = vcombine.low %v268_v60, %v272_v61 }
  0x56   :  { %2222 = vmatpush3.bf16.msra.mxu0 %v2341_v16  ;;  %v2344_v26 = vld [vmem:[#allocation5 + $0x60] sm:$0xff]   ;;  %v2057_v27 = vcombine.high %v291_v23, %v295_v24  ;;  %v2056_v31 = vcombine.low %v291_v23, %v295_v24  ;;  %v280_v6 = vld [vmem:[#allocation7 + $0xa8] sm:$0xff] }
  0x57   :  { %2223 = vmatprep.subr.bf16.mxu0 %v2342_v17  ;;  %v299_v28 = vld [vmem:[#allocation7 + $0x140] sm:$0xff]  ;;  %v2043_v11 = vcombine.high %v276_v5, %v280_v6  ;;  %v284_v13 = vld [vmem:[#allocation7 + $0xc8] sm:$0xff]  ;;  %v2042_v17 = vcombine.low %v276_v5, %v280_v6 }
  0x58   :  { %1032 = vmatpush1.bf16.msra.mxu1 %v2040_v18  ;;  %v303_v29 = vld [vmem:[#allocation7 + $0x160] sm:$0xff]  ;;  %v288_v14 = vld [vmem:[#allocation7 + $0xe8] sm:$0xff] }
  0x59   :  { %1033 = vmatprep.subr.bf16.mxu1 %v2049_v21  ;;  %v2345_v30 = vld [vmem:[#allocation5 + $0x20] sm:$0xff]   ;;  %v2065_v33 = vcombine.high %v299_v28, %v303_v29  ;;  %v2064_v37 = vcombine.low %v299_v28, %v303_v29  ;;  %v2051_v19 = vcombine.high %v284_v13, %v288_v14  ;;  %v292_v21 = vld [vmem:[#allocation7 + $0x108] sm:$0xff] }
  0x5a   :  { %2224 = vmatpush3.bf16.msra.mxu0 %v2343_v22  ;;  %v307_v34 = vld [vmem:[#allocation7 + $0x180] sm:$0xff]  ;;  %v296_v22 = vld [vmem:[#allocation7 + $0x128] sm:$0xff] }
  0x5b   :  { %2225 = vmatprep.subr.bf16.mxu0 %v2344_v26  ;;  %v311_v35 = vld [vmem:[#allocation7 + $0x1a0] sm:$0xff]  ;;  %v300_v29 = vld [vmem:[#allocation7 + $0x148] sm:$0xff] }
  0x5c   :  { %1034 = vmatpush1.bf16.msra.mxu1 %v2048_v25  ;;  %v2073_v40 = vcombine.high %v307_v34, %v311_v35  ;;  %v315_v43 = vld [vmem:[#allocation7 + $0x1c0] sm:$0xff]  ;;  %v2072_v48 = vcombine.low %v307_v34, %v311_v35  ;;  %v2050_v25 = vcombine.low %v284_v13, %v288_v14  ;;  %v316_v46 = vld [vmem:[#allocation7 + $0x1c8] sm:$0xff] }
  0x5d   :  { %1035 = vmatprep.subr.bf16.mxu1 %v2057_v27  ;;  %v319_v44 = vld [vmem:[#allocation7 + $0x1e0] sm:$0xff]  ;;  %v2059_v27 = vcombine.high %v292_v21, %v296_v22  ;;  %v328_v55 = vld [vmem:[#allocation7 + $0x228] sm:$0xff] }
  0x5e   :  { %2226 = vmatpush3.bf16.msra.mxu0 %v2345_v30  ;;  %v2081_v50 = vcombine.high %v315_v43, %v319_v44  ;;  %v323_v53 = vld [vmem:[#allocation7 + $0x200] sm:$0xff]  ;;  %v2080_v57 = vcombine.low %v315_v43, %v319_v44  ;;  %v304_v30 = vld [vmem:[#allocation7 + $0x168] sm:$0xff] }
  0x5f   :  { %2227 = vmatprep.subr.bf16.mxu0 %v2346_v32  ;;  %v327_v54 = vld [vmem:[#allocation7 + $0x220] sm:$0xff]  ;;  %v2067_v35 = vcombine.high %v300_v29, %v304_v30  ;;  %v2066_v42 = vcombine.low %v300_v29, %v304_v30  ;;  %v336_v60 = vld [vmem:[#allocation7 + $0x268] sm:$0xff] }
  0x60   :  { %1036 = vmatpush1.bf16.msra.mxu1 %v2056_v31  ;;  %v2089_v59 = vcombine.high %v323_v53, %v327_v54  ;;  %v331_v63 = vld [vmem:[#allocation7 + $0x240] sm:$0xff]  ;;  %v2088_v2 = vcombine.low %v323_v53, %v327_v54  ;;  %v324_v54 = vld [vmem:[#allocation7 + $0x208] sm:$0xff] }
  0x61   :  { %1037 = vmatprep.subr.bf16.mxu1 %v2065_v33  ;;  %v335_v0 = vld [vmem:[#allocation7 + $0x260] sm:$0xff]  ;;  %v2058_v33 = vcombine.low %v292_v21, %v296_v22  ;;  %v344_v5 = vld [vmem:[#allocation7 + $0x2a8] sm:$0xff] }
  0x62   :  { %2228 = vmatpush3.bf16.msra.mxu0 %v2347_v36  ;;  %v2097_v4 = vcombine.high %v331_v63, %v335_v0  ;;  %v339_v7 = vld [vmem:[#allocation7 + $0x280] sm:$0xff]  ;;  %v2096_v10 = vcombine.low %v331_v63, %v335_v0  ;;  %v2091_v63 = vcombine.high %v324_v54, %v328_v55  ;;  %v269_v0 = vld [vmem:[#allocation7 + $0x50] sm:$0xff]  ;;  %v352_v13 = vld [vmem:[#allocation7 + $0x2e8] sm:$0xff] }
  0x63   :  { %2229 = vmatprep.subr.bf16.mxu0 %v2348_v38  ;;  %v343_v8 = vld [vmem:[#allocation7 + $0x2a0] sm:$0xff]  ;;  %v312_v38 = vld [vmem:[#allocation7 + $0x1a8] sm:$0xff] }
  0x64   :  { %1038 = vmatpush1.bf16.msra.mxu1 %v2064_v37  ;;  %v2105_v12 = vcombine.high %v339_v7, %v343_v8  ;;  %v347_v15 = vld [vmem:[#allocation7 + $0x2c0] sm:$0xff]  ;;  %v2104_v18 = vcombine.low %v339_v7, %v343_v8  ;;  %v308_v37 = vld [vmem:[#allocation7 + $0x188] sm:$0xff]  ;;  %v277_v8 = vld [vmem:[#allocation7 + $0x90] sm:$0xff] }
  0x65   :  { %1039 = vmatprep.subr.bf16.mxu1 %v2073_v40  ;;  %v351_v16 = vld [vmem:[#allocation7 + $0x2e0] sm:$0xff]  ;;  %v2075_v44 = vcombine.high %v308_v37, %v312_v38  ;;  %v360_v21 = vld [vmem:[#allocation7 + $0x328] sm:$0xff] }
  0x66   :  { %2230 = vmatpush3.bf16.msra.mxu0 %v2349_v47  ;;  %v2113_v20 = vcombine.high %v347_v15, %v351_v16  ;;  %v355_v23 = vld [vmem:[#allocation7 + $0x300] sm:$0xff]  ;;  %v2112_v26 = vcombine.low %v347_v15, %v351_v16  ;;  %v320_v47 = vld [vmem:[#allocation7 + $0x1e8] sm:$0xff]  ;;  %v285_v16 = vld [vmem:[#allocation7 + $0xd0] sm:$0xff] }
  0x67   :  { %2231 = vmatprep.subr.bf16.mxu0 %v2350_v49  ;;  %v359_v24 = vld [vmem:[#allocation7 + $0x320] sm:$0xff]  ;;  %v2083_v52 = vcombine.high %v316_v46, %v320_v47  ;;  %v368_v29 = vld [vmem:[#allocation7 + $0x368] sm:$0xff] }
  0x68   :  { %1040 = vmatpush1.bf16.msra.mxu1 %v2072_v48  ;;  %v2121_v28 = vcombine.high %v355_v23, %v359_v24  ;;  %v363_v31 = vld [vmem:[#allocation7 + $0x340] sm:$0xff]  ;;  %v2120_v34 = vcombine.low %v355_v23, %v359_v24  ;;  %v293_v24 = vld [vmem:[#allocation7 + $0x110] sm:$0xff] }
  0x69   :  { %1041 = vmatprep.subr.bf16.mxu1 %v2081_v50  ;;  %v367_v32 = vld [vmem:[#allocation7 + $0x360] sm:$0xff]  ;;  %v2074_v50 = vcombine.low %v308_v37, %v312_v38  ;;  %v376_v37 = vld [vmem:[#allocation7 + $0x3a8] sm:$0xff] }
  0x6a   :  { %2232 = vmatpush3.bf16.msra.mxu0 %v2351_v56  ;;  %v2129_v36 = vcombine.high %v363_v31, %v367_v32  ;;  %v371_v39 = vld [vmem:[#allocation7 + $0x380] sm:$0xff]  ;;  %v2128_v43 = vcombine.low %v363_v31, %v367_v32  ;;  %v261_v56 = vld [vmem:[#allocation7 + $0x10] sm:$0xff] }
  0x6b   :  { %1068 = vmatprep.subr.bf16.mxu0 %v2027_v58  ;;  %v375_v40 = vld [vmem:[#allocation7 + $0x3a0] sm:$0xff]  ;;  %v2082_v58 = vcombine.low %v316_v46, %v320_v47  ;;  %v301_v32 = vld [vmem:[#allocation7 + $0x150] sm:$0xff]  ;;  %v384_v46 = vld [vmem:[#allocation7 + $0x3e8] sm:$0xff] }
  0x6c   :  { %1042 = vmatpush1.bf16.msra.mxu1 %v2080_v57  ;;  %v2137_v45 = vcombine.high %v371_v39, %v375_v40  ;;  %v379_v48 = vld [vmem:[#allocation7 + $0x3c0] sm:$0xff]  ;;  %v2136_v51 = vcombine.low %v371_v39, %v375_v40  ;;  %v265_v57 = vld [vmem:[#allocation7 + $0x30] sm:$0xff] }
  0x6d   :  { %1043 = vmatprep.subr.bf16.mxu1 %v2089_v59  ;;  %251 = vmatmul.mubr.bf16.vlgmr.msra.gmra.mrb[0].mxu0 %v2641_v62  ;;  %v383_v49 = vld [vmem:[#allocation7 + $0x3e0] sm:$0xff]  ;;  %v332_v59 = vld [vmem:[#allocation7 + $0x248] sm:$0xff]  ;;  %v2028_v6 = vcombine.low %v261_v56, %v265_v57  ;;  %v309_v40 = vld [vmem:[#allocation7 + $0x190] sm:$0xff] }
  0x6e   :  { %1069 = vmatpush1.bf16.msra.mxu0 %v2026_v1  ;;  %1100 = vmatprep.mubr.bf16.mxu0 %v2637_v41  ;;  %v2145_v53 = vcombine.high %v379_v48, %v383_v49  ;;  %v2144_v61 = vcombine.low %v379_v48, %v383_v49  ;;  %v273_v1 = vld [vmem:[#allocation7 + $0x70] sm:$0xff]  ;;  %v2099_v7 = vcombine.high %v332_v59, %v336_v60 }
  0x6f   :  { %1070 = vmatprep.subr.bf16.mxu0 %v2035_v3  ;;  %v2090_v3 = vcombine.low %v324_v54, %v328_v55  ;;  %v2036_v14 = vcombine.low %v269_v0, %v273_v1  ;;  %v317_v49 = vld [vmem:[#allocation7 + $0x1d0] sm:$0xff]  ;;  %v266_v54 = vld [vmem:[#allocation7 + $0x38] sm:$0xff] }
  0x70   :  { %1044 = vmatpush1.bf16.msra.mxu1 %v2088_v2  ;;  %v2029_v2 = vcombine.high %v261_v56, %v265_v57  ;;  %v325_v57 = vld [vmem:[#allocation7 + $0x210] sm:$0xff] }
  0x71   :  { %1045 = vmatprep.subr.bf16.mxu1 %v2097_v4  ;;  %v340_v4 = vld [vmem:[#allocation7 + $0x288] sm:$0xff] }
  0x72   :  { %1071 = vmatpush1.bf16.msra.mxu0 %v2034_v9  ;;  %v281_v9 = vld [vmem:[#allocation7 + $0xb0] sm:$0xff]  ;;  %v2107_v15 = vcombine.high %v340_v4, %v344_v5 }
  0x73   :  { %1072 = vmatprep.subr.bf16.mxu0 %v2043_v11  ;;  %v2098_v11 = vcombine.low %v332_v59, %v336_v60  ;;  %v2044_v22 = vcombine.low %v277_v8, %v281_v9 }
  0x74   :  { %1046 = vmatpush1.bf16.msra.mxu1 %v2096_v10  ;;  %v2037_v10 = vcombine.high %v269_v0, %v273_v1 }
  0x75   :  { %1047 = vmatprep.subr.bf16.mxu1 %v2105_v12  ;;  %v348_v12 = vld [vmem:[#allocation7 + $0x2c8] sm:$0xff] }
  0x76   :  { %1073 = vmatpush1.bf16.msra.mxu0 %v2042_v17  ;;  %v289_v17 = vld [vmem:[#allocation7 + $0xf0] sm:$0xff]  ;;  %v2115_v23 = vcombine.high %v348_v12, %v352_v13 }
  0x77   :  { %1074 = vmatprep.subr.bf16.mxu0 %v2051_v19  ;;  %v2106_v19 = vcombine.low %v340_v4, %v344_v5  ;;  %v2052_v30 = vcombine.low %v285_v16, %v289_v17 }
  0x78   :  { %1048 = vmatpush1.bf16.msra.mxu1 %v2104_v18  ;;  %v2045_v18 = vcombine.high %v277_v8, %v281_v9 }
  0x79   :  { %1049 = vmatprep.subr.bf16.mxu1 %v2113_v20  ;;  %v356_v20 = vld [vmem:[#allocation7 + $0x308] sm:$0xff] }
  0x7a   :  { %1075 = vmatpush1.bf16.msra.mxu0 %v2050_v25  ;;  %v297_v25 = vld [vmem:[#allocation7 + $0x130] sm:$0xff]  ;;  %v2123_v31 = vcombine.high %v356_v20, %v360_v21 }
  0x7b   :  { %1076 = vmatprep.subr.bf16.mxu0 %v2059_v27  ;;  %v2114_v27 = vcombine.low %v348_v12, %v352_v13  ;;  %v2060_v38 = vcombine.low %v293_v24, %v297_v25 }
  0x7c   :  { %1050 = vmatpush1.bf16.msra.mxu1 %v2112_v26  ;;  %v2053_v26 = vcombine.high %v285_v16, %v289_v17  ;;  %v286_v17 = vld [vmem:[#allocation7 + $0xd8] sm:$0xff] }
  0x7d   :  { %1051 = vmatprep.subr.bf16.mxu1 %v2121_v28  ;;  %v364_v28 = vld [vmem:[#allocation7 + $0x348] sm:$0xff] }
  0x7e   :  { %1077 = vmatpush1.bf16.msra.mxu0 %v2058_v33  ;;  %v305_v33 = vld [vmem:[#allocation7 + $0x170] sm:$0xff]  ;;  %v2131_v39 = vcombine.high %v364_v28, %v368_v29 }
  0x7f   :  { %1078 = vmatprep.subr.bf16.mxu0 %v2067_v35  ;;  %v2122_v35 = vcombine.low %v356_v20, %v360_v21  ;;  %v2068_v47 = vcombine.low %v301_v32, %v305_v33  ;;  %v353_v20 = vld [vmem:[#allocation7 + $0x2f0] sm:$0xff] }
  0x80   :  { %1052 = vmatpush1.bf16.msra.mxu1 %v2120_v34  ;;  %v2061_v34 = vcombine.high %v293_v24, %v297_v25  ;;  %v294_v25 = vld [vmem:[#allocation7 + $0x118] sm:$0xff] }
  0x81   :  { %1053 = vmatprep.subr.bf16.mxu1 %v2129_v36  ;;  %v372_v36 = vld [vmem:[#allocation7 + $0x388] sm:$0xff] }
  0x82   :  { %1079 = vmatpush1.bf16.msra.mxu0 %v2066_v42  ;;  %v313_v42 = vld [vmem:[#allocation7 + $0x1b0] sm:$0xff]  ;;  %v2139_v48 = vcombine.high %v372_v36, %v376_v37 }
  0x83   :  { %1080 = vmatprep.subr.bf16.mxu0 %v2075_v44  ;;  %v2130_v44 = vcombine.low %v364_v28, %v368_v29  ;;  %v2076_v55 = vcombine.low %v309_v40, %v313_v42 }
  0x84   :  { %1054 = vmatpush1.bf16.msra.mxu1 %v2128_v43  ;;  %v2069_v43 = vcombine.high %v301_v32, %v305_v33  ;;  %v302_v32 = vld [vmem:[#allocation7 + $0x158] sm:$0xff] }
  0x85   :  { %1055 = vmatprep.subr.bf16.mxu1 %v2137_v45  ;;  %v380_v45 = vld [vmem:[#allocation7 + $0x3c8] sm:$0xff]  ;;  %v306_v33 = vld [vmem:[#allocation7 + $0x178] sm:$0xff] }
  0x86   :  { %1081 = vmatpush1.bf16.msra.mxu0 %v2074_v50  ;;  %v321_v50 = vld [vmem:[#allocation7 + $0x1f0] sm:$0xff]  ;;  %v2147_v56 = vcombine.high %v380_v45, %v384_v46  ;;  %v2146_v60 = vcombine.low %v380_v45, %v384_v46  ;;  %v2070_v45 = vcombine.low %v302_v32, %v306_v33 }
  0x87   :  { %1082 = vmatprep.subr.bf16.mxu0 %v2083_v52  ;;  %v2138_v52 = vcombine.low %v372_v36, %v376_v37  ;;  %v2085_v59 = vcombine.high %v317_v49, %v321_v50  ;;  %v2084_v0 = vcombine.low %v317_v49, %v321_v50  ;;  %v318_v49 = vld [vmem:[#allocation7 + $0x1d8] sm:$0xff] }
  0x88   :  { %1056 = vmatpush1.bf16.msra.mxu1 %v2136_v51  ;;  %v2077_v51 = vcombine.high %v309_v40, %v313_v42  ;;  %v310_v40 = vld [vmem:[#allocation7 + $0x198] sm:$0xff] }
  0x89   :  { %1057 = vmatprep.subr.bf16.mxu1 %v2145_v53  ;;  %v262_v53 = vld [vmem:[#allocation7 + $0x18] sm:$0xff] }
  0x8a   :  { %1083 = vmatpush1.bf16.msra.mxu0 %v2082_v58  ;;  %v329_v58 = vld [vmem:[#allocation7 + $0x230] sm:$0xff]  ;;  %v2031_v1 = vcombine.high %v262_v53, %v266_v54  ;;  %v2030_v5 = vcombine.low %v262_v53, %v266_v54  ;;  %v314_v42 = vld [vmem:[#allocation7 + $0x1b8] sm:$0xff] }
  0x8b   :  { %1084 = vmatprep.subr.bf16.mxu0 %v2091_v63  ;;  %v274_v63 = vld [vmem:[#allocation7 + $0x78] sm:$0xff]  ;;  %v2093_v4 = vcombine.high %v325_v57, %v329_v58  ;;  %v2092_v8 = vcombine.low %v325_v57, %v329_v58  ;;  %v2078_v53 = vcombine.low %v310_v40, %v314_v42 }
  0x8c   :  { %1058 = vmatpush1.bf16.msra.mxu1 %v2144_v61  ;;  %v270_v61 = vld [vmem:[#allocation7 + $0x58] sm:$0xff] }
  0x8d   :  { %1109 = vmatprep.subr.bf16.mxu1 %v2029_v2  ;;  %v333_v2 = vld [vmem:[#allocation7 + $0x250] sm:$0xff]  ;;  %v2039_v9 = vcombine.high %v270_v61, %v274_v63  ;;  %v2038_v13 = vcombine.low %v270_v61, %v274_v63  ;;  %v322_v50 = vld [vmem:[#allocation7 + $0x1f8] sm:$0xff] }
  0x8e   :  { %1085 = vmatpush1.bf16.msra.mxu0 %v2090_v3  ;;  %v337_v3 = vld [vmem:[#allocation7 + $0x270] sm:$0xff]  ;;  %v326_v57 = vld [vmem:[#allocation7 + $0x218] sm:$0xff] }
  0x8f   :  { %1060 = vmatmul.mubr.bf16.vlgmr.msra.gmra.mrb[0].mxu1 %v2641_v62  ;;  %1086 = vmatprep.subr.bf16.mxu0 %v2099_v7  ;;  %v282_v7 = vld [vmem:[#allocation7 + $0xb8] sm:$0xff]  ;;  %v2101_v12 = vcombine.high %v333_v2, %v337_v3 }
  0x90   :  { %1110 = vmatpush1.bf16.msra.mxu1 %v2028_v6  ;;  %1141 = vmatprep.mubr.bf16.mxu1 %v2637_v41  ;;  %v278_v6 = vld [vmem:[#allocation7 + $0x98] sm:$0xff] }
  0x91   :  { %1111 = vmatprep.subr.bf16.mxu1 %v2037_v10  ;;  %v341_v10 = vld [vmem:[#allocation7 + $0x290] sm:$0xff]  ;;  %v2046_v21 = vcombine.low %v278_v6, %v282_v7  ;;  %v330_v58 = vld [vmem:[#allocation7 + $0x238] sm:$0xff] }
  0x92   :  { %1087 = vmatpush1.bf16.msra.mxu0 %v2098_v11  ;;  %v345_v11 = vld [vmem:[#allocation7 + $0x2b0] sm:$0xff]  ;;  %v2095_v61 = vcombine.high %v326_v57, %v330_v58  ;;  %v334_v63 = vld [vmem:[#allocation7 + $0x258] sm:$0xff] }
  0x93   :  { %1088 = vmatprep.subr.bf16.mxu0 %v2107_v15  ;;  %v2047_v15 = vcombine.high %v278_v6, %v282_v7  ;;  %v2109_v16 = vcombine.high %v341_v10, %v345_v11  ;;  %v346_v6 = vld [vmem:[#allocation7 + $0x2b8] sm:$0xff]  ;;  %v2354_v7 = vld [vmem:[#allocation8 + $0x48] sm:$0xff]  }
  0x94   :  { %1112 = vmatpush1.bf16.msra.mxu1 %v2036_v14  ;;  %v2100_v14 = vcombine.low %v333_v2, %v337_v3  ;;  %v2094_v2 = vcombine.low %v326_v57, %v330_v58  ;;  %v2382_v57 = vld [vmem:[#allocation8 + $0xf8] sm:$0xff]  }
  0x95   :  { %1113 = vmatprep.subr.bf16.mxu1 %v2045_v18  ;;  %v290_v18 = vld [vmem:[#allocation7 + $0xf8] sm:$0xff] }
  0x96   :  { %1089 = vmatpush1.bf16.msra.mxu0 %v2106_v19  ;;  %v349_v19 = vld [vmem:[#allocation7 + $0x2d0] sm:$0xff]  ;;  %v2054_v28 = vcombine.low %v286_v17, %v290_v18  ;;  %v2383_v58 = vld [vmem:[#allocation8 + $0xb8] sm:$0xff]  }
  0x97   :  { %1090 = vmatprep.subr.bf16.mxu0 %v2115_v23  ;;  %v2055_v23 = vcombine.high %v286_v17, %v290_v18  ;;  %v2117_v24 = vcombine.high %v349_v19, %v353_v20  ;;  %v2116_v29 = vcombine.low %v349_v19, %v353_v20  ;;  %v358_v17 = vld [vmem:[#allocation7 + $0x318] sm:$0xff] }
  0x98   :  { %1114 = vmatpush1.bf16.msra.mxu1 %v2044_v22  ;;  %v2108_v22 = vcombine.low %v341_v10, %v345_v11  ;;  %v2355_v10 = vld [vmem:[#allocation8 + $0x8] sm:$0xff]   ;;  %v350_v11 = vld [vmem:[#allocation7 + $0x2d8] sm:$0xff] }
  0x99   :  { %1115 = vmatprep.subr.bf16.mxu1 %v2053_v26  ;;  %v357_v26 = vld [vmem:[#allocation7 + $0x310] sm:$0xff]  ;;  %v362_v18 = vld [vmem:[#allocation7 + $0x338] sm:$0xff] }
  0x9a   :  { %1091 = vmatpush1.bf16.msra.mxu0 %v2114_v27  ;;  %v361_v27 = vld [vmem:[#allocation7 + $0x330] sm:$0xff]  ;;  %v2360_v19 = vld [vmem:[#allocation8 + $0x58] sm:$0xff]  }
  0x9b   :  { %1092 = vmatprep.subr.bf16.mxu0 %v2123_v31  ;;  %v2125_v31 = vcombine.high %v357_v26, %v361_v27  ;;  %v2124_v37 = vcombine.low %v357_v26, %v361_v27  ;;  %v2366_v27 = vld [vmem:[#allocation8 + $0x20] sm:$0xff]  }
  0x9c   :  { %1116 = vmatpush1.bf16.msra.mxu1 %v2052_v30 }
  0x9d   :  { %1117 = vmatprep.subr.bf16.mxu1 %v2061_v34  ;;  %v365_v34 = vld [vmem:[#allocation7 + $0x350] sm:$0xff] }
  0x9e   :  { %1093 = vmatpush1.bf16.msra.mxu0 %v2122_v35  ;;  %v369_v35 = vld [vmem:[#allocation7 + $0x370] sm:$0xff] }
  0x9f   :  { %1094 = vmatprep.subr.bf16.mxu0 %v2131_v39  ;;  %v2133_v39 = vcombine.high %v365_v34, %v369_v35  ;;  %v2132_v46 = vcombine.low %v365_v34, %v369_v35  ;;  %v386_v34 = vld [vmem:[#allocation7 + $0x3f8] sm:$0xff] }
  0xa0   :  { %1118 = vmatpush1.bf16.msra.mxu1 %v2060_v38  ;;  %v2071_v38 = vcombine.high %v302_v32, %v306_v33  ;;  %v382_v33 = vld [vmem:[#allocation7 + $0x3d8] sm:$0xff] }
  0xa1   :  { %1119 = vmatprep.subr.bf16.mxu1 %v2069_v43  ;;  %v373_v43 = vld [vmem:[#allocation7 + $0x390] sm:$0xff] }
  0xa2   :  { %1095 = vmatpush1.bf16.msra.mxu0 %v2130_v44  ;;  %v377_v44 = vld [vmem:[#allocation7 + $0x3b0] sm:$0xff] }
  0xa3   :  { %1096 = vmatprep.subr.bf16.mxu0 %v2139_v48  ;;  %v2141_v48 = vcombine.high %v373_v43, %v377_v44  ;;  %v2140_v54 = vcombine.low %v373_v43, %v377_v44  ;;  %v2374_v43 = vld [vmem:[#allocation8 + $0x30] sm:$0xff]   ;;  %v2361_v44 = vld [vmem:[#allocation8 + $0xc8] sm:$0xff]  }
  0xa4   :  { %1120 = vmatpush1.bf16.msra.mxu1 %v2068_v47  ;;  %v2079_v47 = vcombine.high %v310_v40, %v314_v42  ;;  %v2372_v40 = vld [vmem:[#allocation8 + $0x70] sm:$0xff]   ;;  %v2359_v42 = vld [vmem:[#allocation8 + $0x80] sm:$0xff]  }
  0xa5   :  { %1121 = vmatprep.subr.bf16.mxu1 %v2077_v51  ;;  %v381_v51 = vld [vmem:[#allocation7 + $0x3d0] sm:$0xff] }
  0xa6   :  { %1097 = vmatpush1.bf16.msra.mxu0 %v2138_v52  ;;  %v385_v52 = vld [vmem:[#allocation7 + $0x3f0] sm:$0xff] }
  0xa7   :  { %1098 = vmatprep.subr.bf16.mxu0 %v2147_v56  ;;  %v2149_v56 = vcombine.high %v381_v51, %v385_v52 }
  0xa8   :  { %1122 = vmatpush1.bf16.msra.mxu1 %v2076_v55  ;;  %v2087_v55 = vcombine.high %v318_v49, %v322_v50 }
  0xa9   :  { %1123 = vmatprep.subr.bf16.mxu1 %v2085_v59  ;;  %v2086_v59 = vcombine.low %v318_v49, %v322_v50  ;;  %v2369_v49 = vld [vmem:[#allocation8 + $0xd8] sm:$0xff]  }
  0xaa   :  { %1099 = vmatpush1.bf16.msra.mxu0 %v2146_v60  ;;  %v2148_v60 = vcombine.low %v381_v51, %v385_v52  ;;  %v2371_v50 = vld [vmem:[#allocation8 + $0x98] sm:$0xff]   ;;  %v2373_v51 = vld [vmem:[#allocation8 + $0xe0] sm:$0xff]  }
  0xab   :  { %1150 = vmatprep.subr.bf16.mxu0 %v2031_v1  ;;  %v2352_v1 = vld [vmem:[#allocation8 + $0x40] sm:$0xff]  }
  0xac   :  { %1124 = vmatpush1.bf16.msra.mxu1 %v2084_v0  ;;  %v338_v0 = vld [vmem:[#allocation7 + $0x278] sm:$0xff]  ;;  %v2375_v52 = vld [vmem:[#allocation8 + $0xa0] sm:$0xff]  }
  0xad   :  { %1125 = vmatprep.subr.bf16.mxu1 %v2093_v4  ;;  %1101 = vmatmul.mubr.bf16.vlgmr.msra.gmra.mrb[4].mxu0 %v2641_v62  ;;  %v2103_v3 = vcombine.high %v334_v63, %v338_v0  ;;  %v2353_v4 = vld [vmem:[#allocation8] sm:$0xff]  }
  0xae   :  { %1151 = vmatpush1.bf16.msra.mxu0 %v2030_v5  ;;  %1182 = vmatprep.mubr.bf16.mxu0 %v2637_v41  ;;  %v298_v41 = vld [vmem:[#allocation7 + $0x138] sm:$0xff] }
  0xaf   :  { %1152 = vmatprep.subr.bf16.mxu0 %v2039_v9  ;;  %v2063_v30 = vcombine.high %v294_v25, %v298_v41  ;;  %v2062_v36 = vcombine.low %v294_v25, %v298_v41  ;;  %v342_v5 = vld [vmem:[#allocation7 + $0x298] sm:$0xff]  ;;  %v2364_v25 = vld [vmem:[#allocation8 + $0x60] sm:$0xff]   ;;  %v2126_v41 = vcombine.low %v358_v17, %v362_v18 }
  0xb0   :  { %1126 = vmatpush1.bf16.msra.mxu1 %v2092_v8  ;;  %v2102_v8 = vcombine.low %v334_v63, %v338_v0  ;;  %v2111_v9 = vcombine.high %v342_v5, %v346_v6 }
  0xb1   :  { %1127 = vmatprep.subr.bf16.mxu1 %v2101_v12  ;;  %v354_v12 = vld [vmem:[#allocation7 + $0x2f8] sm:$0xff] }
  0xb2   :  { %1153 = vmatpush1.bf16.msra.mxu0 %v2038_v13  ;;  %v2356_v13 = vld [vmem:[#allocation8 + $0x50] sm:$0xff]   ;;  %v2118_v20 = vcombine.low %v350_v11, %v354_v12 }
  0xb3   :  { %1154 = vmatprep.subr.bf16.mxu0 %v2047_v15  ;;  %v2119_v15 = vcombine.high %v350_v11, %v354_v12 }
  0xb4   :  { %1128 = vmatpush1.bf16.msra.mxu1 %v2100_v14  ;;  %v2110_v14 = vcombine.low %v342_v5, %v346_v6  ;;  %v2659_v6 = vld [vmem:[%s2709_s4] sm:$0xff] }
  0xb5   :  { %1129 = vmatprep.subr.bf16.mxu1 %v2109_v16  ;;  %v2358_v16 = vld [vmem:[#allocation8 + $0x10] sm:$0xff]  }
  0xb6   :  { %1155 = vmatpush1.bf16.msra.mxu0 %v2046_v21  ;;  %v2127_v21 = vcombine.high %v358_v17, %v362_v18 }
  0xb7   :  { %1156 = vmatprep.subr.bf16.mxu0 %v2055_v23  ;;  %v366_v23 = vld [vmem:[#allocation7 + $0x358] sm:$0xff] }
  0xb8   :  { %1130 = vmatpush1.bf16.msra.mxu1 %v2108_v22  ;;  %v2362_v22 = vld [vmem:[#allocation8 + $0x18] sm:$0xff]  }
  0xb9   :  { %1131 = vmatprep.subr.bf16.mxu1 %v2117_v24  ;;  %v370_v24 = vld [vmem:[#allocation7 + $0x378] sm:$0xff] }
  0xba   :  { %1157 = vmatpush1.bf16.msra.mxu0 %v2054_v28  ;;  %v2135_v26 = vcombine.high %v366_v23, %v370_v24  ;;  %v374_v28 = vld [vmem:[#allocation7 + $0x398] sm:$0xff] }
  0xbb   :  { %1158 = vmatprep.subr.bf16.mxu0 %v2063_v30  ;;  %v2368_v30 = vld [vmem:[#allocation8 + $0x68] sm:$0xff]  }
  0xbc   :  { %1132 = vmatpush1.bf16.msra.mxu1 %v2116_v29  ;;  %v378_v29 = vld [vmem:[#allocation7 + $0x3b8] sm:$0xff] }
  0xbd   :  { %1133 = vmatprep.subr.bf16.mxu1 %v2125_v31  ;;  %v2134_v31 = vcombine.low %v366_v23, %v370_v24  ;;  %v2143_v32 = vcombine.high %v374_v28, %v378_v29  ;;  %v2142_v35 = vcombine.low %v374_v28, %v378_v29  ;;  %v2389_v28 = vld [vmem:[#allocation8 + $0x110] sm:$0xff]   ;;  %v2390_v29 = vld [vmem:[#allocation8 + $0x158] sm:$0xff]  }
  0xbe   :  { %1159 = vmatpush1.bf16.msra.mxu0 %v2062_v36  ;;  %v2151_v36 = vcombine.high %v382_v33, %v386_v34 }
  0xbf   :  { %1160 = vmatprep.subr.bf16.mxu0 %v2071_v38  ;;  %v2357_v38 = vld [vmem:[#allocation8 + $0xc0] sm:$0xff]  }
  0xc0   :  { %1134 = vmatpush1.bf16.msra.mxu1 %v2124_v37  ;;  %v2150_v37 = vcombine.low %v382_v33, %v386_v34  ;;  %v2393_v33 = vld [vmem:[#allocation8 + $0x120] sm:$0xff]  }
  0xc1   :  { %1135 = vmatprep.subr.bf16.mxu1 %v2133_v39  ;;  %v2370_v39 = vld [vmem:[#allocation8 + $0x28] sm:$0xff]  }
  0xc2   :  { %1161 = vmatpush1.bf16.msra.mxu0 %v2070_v45  ;;  %v2376_v45 = vld [vmem:[#allocation8 + $0x78] sm:$0xff]  }
  0xc3   :  { %1162 = vmatprep.subr.bf16.mxu0 %v2079_v47  ;;  %v2365_v47 = vld [vmem:[#allocation8 + $0xd0] sm:$0xff]  }
  0xc4   :  { %1136 = vmatpush1.bf16.msra.mxu1 %v2132_v46  ;;  %v2363_v46 = vld [vmem:[#allocation8 + $0x88] sm:$0xff]  }
  0xc5   :  { %1137 = vmatprep.subr.bf16.mxu1 %v2141_v48  ;;  %v2367_v48 = vld [vmem:[#allocation8 + $0x90] sm:$0xff]  }
  0xc6   :  { %1163 = vmatpush1.bf16.msra.mxu0 %v2078_v53  ;;  %v2377_v53 = vld [vmem:[#allocation8 + $0xe8] sm:$0xff]  }
  0xc7   :  { %1164 = vmatprep.subr.bf16.mxu0 %v2087_v55  ;;  %v2380_v55 = vld [vmem:[#allocation8 + $0xf0] sm:$0xff]  }
  0xc8   :  { %1138 = vmatpush1.bf16.msra.mxu1 %v2140_v54  ;;  %v2379_v54 = vld [vmem:[#allocation8 + $0xa8] sm:$0xff]  }
  0xc9   :  { %1139 = vmatprep.subr.bf16.mxu1 %v2149_v56  ;;  %v2381_v56 = vld [vmem:[#allocation8 + $0xb0] sm:$0xff]  }
  0xca   :  { %1165 = vmatpush1.bf16.msra.mxu0 %v2086_v59  ;;  %v2384_v59 = vld [vmem:[#allocation8 + $0x140] sm:$0xff]  }
  0xcb   :  { %1166 = vmatprep.subr.bf16.mxu0 %v2095_v61 }
  0xcc   :  { %1140 = vmatpush1.bf16.msra.mxu1 %v2148_v60  ;;  %v2400_v60 = vld [vmem:[#allocation8 + $0x1c0] sm:$0xff]  }
  0xcd   :  { %2239 = vmatprep.subr.bf16.mxu1 %v2352_v1 }
  0xce   :  { %1167 = vmatpush1.bf16.msra.mxu0 %v2094_v2 }
  0xcf   :  { %1142 = vmatmul.mubr.bf16.vlgmr.msra.gmra.mrb[4].mxu1 %v2641_v62  ;;  %1168 = vmatprep.subr.bf16.mxu0 %v2103_v3  ;;  %v1192_v3 = vlaneseq }
  0xd0   :  { %2240 = vmatpush3.bf16.msra.mxu1 %v2353_v4 }
  0xd1   :  { %2241 = vmatprep.subr.bf16.mxu1 %v2354_v7  ;;  %v2653_v4 = vshrl.u32 %v1192_v3, 7  ;;  %v2409_v3 = vld [vmem:[#allocation8 + $0x1a0] sm:$0xff]  }
  0xd2   :  { %1169 = vmatpush1.bf16.msra.mxu0 %v2102_v8  ;;  %v2665_v8 = vld [vmem:[%s2710_s5] sm:$0xff] }
  0xd3   :  { %1170 = vmatprep.subr.bf16.mxu0 %v2111_v9  ;;  %v1194_v5 = vsub.s32 0, %v2653_v4  ;;  %v1198_v7 = vsub.s32 1, %v2653_v4  ;;  %v1206_v34 = vsub.s32 3, %v2653_v4 }
  0xd4   :  { %2242 = vmatpush3.bf16.msra.mxu1 %v2355_v10 }
  0xd5   :  { %2243 = vmatprep.subr.bf16.mxu1 %v2356_v13  ;;  %v1195_v9 = vrot.slane %v2659_v6, %v1194_v5  ;;  %v1199_v10 = vrot.slane %v2659_v6, %v1198_v7  ;;  %v1245_v11 = vrot.slane %v2665_v8, %v1194_v5  ;;  %v1249_v13 = vrot.slane %v2665_v8, %v1198_v7  ;;  %v2410_v5 = vld [vmem:[#allocation8 + $0x1e8] sm:$0xff]  }
  0xd6   :  { %1171 = vmatpush1.bf16.msra.mxu0 %v2110_v14  ;;  %v1210_v7 = vsub.s32 4, %v2653_v4 }
  0xd7   :  { %1172 = vmatprep.subr.bf16.mxu0 %v2119_v15 }
  0xd8   :  { %2244 = vmatpush3.bf16.msra.mxu1 %v2358_v16 }
  0xd9   :  { %2245 = vmatprep.subr.bf16.mxu1 %v2360_v19 }
  0xda   :  { %1173 = vmatpush1.bf16.msra.mxu0 %v2118_v20 }
  0xdb   :  { %1174 = vmatprep.subr.bf16.mxu0 %v2127_v21 }
  0xdc   :  { %2246 = vmatpush3.bf16.msra.mxu1 %v2362_v22 }
  0xdd   :  { %2247 = vmatprep.subr.bf16.mxu1 %v2364_v25  ;;  %v2385_v25 = vld [vmem:[#allocation8 + $0x100] sm:$0xff]  }
  0xde   :  { %1175 = vmatpush1.bf16.msra.mxu0 %v2126_v41  ;;  %v2386_v41 = vld [vmem:[#allocation8 + $0x148] sm:$0xff]  }
  0xdf   :  { %1176 = vmatprep.subr.bf16.mxu0 %v2135_v26  ;;  %v2387_v26 = vld [vmem:[#allocation8 + $0x108] sm:$0xff]  }
  0xe0   :  { %2248 = vmatpush3.bf16.msra.mxu1 %v2366_v27  ;;  %v2388_v27 = vld [vmem:[#allocation8 + $0x150] sm:$0xff]  }
  0xe1   :  { %2249 = vmatprep.subr.bf16.mxu1 %v2368_v30  ;;  %v2391_v30 = vld [vmem:[#allocation8 + $0x118] sm:$0xff]  }
  0xe2   :  { %1177 = vmatpush1.bf16.msra.mxu0 %v2134_v31  ;;  %v2392_v31 = vld [vmem:[#allocation8 + $0x160] sm:$0xff]  }
  0xe3   :  { %1178 = vmatprep.subr.bf16.mxu0 %v2143_v32  ;;  %v1202_v32 = vsub.s32 2, %v2653_v4 }
  0xe4   :  { %2250 = vmatpush3.bf16.msra.mxu1 %v2370_v39  ;;  %v2396_v39 = vld [vmem:[#allocation8 + $0x170] sm:$0xff]  }
  0xe5   :  { %2251 = vmatprep.subr.bf16.mxu1 %v2372_v40  ;;  %v1253_v40 = vrot.slane %v2665_v8, %v1202_v32 }
  0xe6   :  { %1179 = vmatpush1.bf16.msra.mxu0 %v2142_v35  ;;  %v2394_v35 = vld [vmem:[#allocation8 + $0x168] sm:$0xff]  }
  0xe7   :  { %1180 = vmatprep.subr.bf16.mxu0 %v2151_v36  ;;  %v1203_v36 = vrot.slane %v2659_v6, %v1202_v32 }
  0xe8   :  { %2252 = vmatpush3.bf16.msra.mxu1 %v2374_v43  ;;  %v1257_v43 = vrot.slane %v2665_v8, %v1206_v34 }
  0xe9   :  { %2253 = vmatprep.subr.bf16.mxu1 %v2376_v45 }
  0xea   :  { %1181 = vmatpush1.bf16.msra.mxu0 %v2150_v37  ;;  %v2395_v37 = vld [vmem:[#allocation8 + $0x128] sm:$0xff]  }
  0xeb   :  { %2261 = vmatprep.subr.bf16.mxu0 %v2357_v38  ;;  %v1207_v38 = vrot.slane %v2659_v6, %v1206_v34 }
  0xed   :  { %1183 = vmatmul.mubr.bf16.vlgmr.msra.gmra.mrb[8].mxu0 %v2641_v62  ;;  %v2378_v62 = vld [vmem:[#allocation8 + $0x38] sm:$0xff]  }
  0xee   :  { %2262 = vmatpush3.bf16.msra.mxu0 %v2359_v42  ;;  %2254 = vmatpush3.bf16.msra.mxu1 %v2378_v62  ;;  %v2399_v62 = vld [vmem:[#allocation8 + $0x138] sm:$0xff]  }
  0xef   :  { %2263 = vmatprep.subr.bf16.mxu0 %v2361_v44  ;;  %2283 = vmatprep.subr.bf16.mxu1 %v2384_v59  ;;  %v2403_v59 = vld [vmem:[#allocation8 + $0x188] sm:$0xff]  }
  0xf2   :  { %2264 = vmatpush3.bf16.msra.mxu0 %v2363_v46  ;;  %v2397_v46 = vld [vmem:[#allocation8 + $0x130] sm:$0xff]  }
  0xf3   :  { %2265 = vmatprep.subr.bf16.mxu0 %v2365_v47 }
  0xf6   :  { %2266 = vmatpush3.bf16.msra.mxu0 %v2367_v48 }
  0xf7   :  { %2267 = vmatprep.subr.bf16.mxu0 %v2369_v49  ;;  %v2398_v49 = vld [vmem:[#allocation8 + $0x178] sm:$0xff]  }
  0xfa   :  { %2268 = vmatpush3.bf16.msra.mxu0 %v2371_v50 }
  0xfb   :  { %2269 = vmatprep.subr.bf16.mxu0 %v2373_v51 }
  0xfe   :  { %2270 = vmatpush3.bf16.msra.mxu0 %v2375_v52 }
  0xff   :  { %2271 = vmatprep.subr.bf16.mxu0 %v2377_v53 }
 0x102   :  { %2272 = vmatpush3.bf16.msra.mxu0 %v2379_v54 }
 0x103   :  { %2273 = vmatprep.subr.bf16.mxu0 %v2380_v55 }
 0x106   :  { %2274 = vmatpush3.bf16.msra.mxu0 %v2381_v56  ;;  %v2401_v56 = vld [vmem:[#allocation8 + $0x180] sm:$0xff]  }
 0x107   :  { %2275 = vmatprep.subr.bf16.mxu0 %v2382_v57 }
 0x10a   :  { %2276 = vmatpush3.bf16.msra.mxu0 %v2383_v58  ;;  %v2402_v58 = vld [vmem:[#allocation8 + $0x1c8] sm:$0xff]  }
 0x10b   :  { %2305 = vmatprep.subr.bf16.mxu0 %v2400_v60  ;;  %v2404_v60 = vld [vmem:[#allocation8 + $0x1d0] sm:$0xff]  }
 0x140   :  { %v2233_v61 = vpop.f32.mrb[0].mxu0 }
 0x141   :  { %v2234_v63 = vpop.f32.mrb[1].mxu0 }
 0x142   :  { %v2651_v0 = vadd.f32 %v2234_v63, %v2233_v61  ;;  %v2236_v1 = vpop.f32.mrb[2].mxu0  ;;  %v2405_v61 = vld [vmem:[#allocation8 + $0x190] sm:$0xff]   ;;  %v2406_v63 = vld [vmem:[#allocation8 + $0x1d8] sm:$0xff]  }
 0x143   :  { %v2237_v2 = vpop.f32.mrb[3].mxu0  ;;  %v2407_v1 = vld [vmem:[#allocation8 + $0x198] sm:$0xff]  }
 0x144   :  { %v2408_v2 = vld [vmem:[#allocation8 + $0x1e0] sm:$0xff]  }
 0x162   :  { %v1061_v12 = vpop.f32.mrb[0].mxu1 }
 0x163   :  { %v1232_v14 = vsub.f32 %v1195_v9, %v1061_v12  ;;  %v1063_v15 = vpop.f32.mrb[1].mxu1  ;;  %v1214_v9 = vsub.s32 5, %v2653_v4  ;;  %v1211_v12 = vrot.slane %v2659_v6, %v1210_v7 }
 0x164   :  { %v1233_v16 = vsub.f32 %v1199_v10, %v1063_v15  ;;  %v1065_v17 = vpop.f32.mrb[2].mxu1  ;;  %v2411_v10 = vld [vmem:[#allocation8 + $0x1a8] sm:$0xff]   ;;  %v2413_v15 = vld [vmem:[#allocation8 + $0x1b0] sm:$0xff]  }
 0x165   :  { %v1282_v18 = vmul.f32 %v1245_v11, %v1232_v14  ;;  %v1066_v19 = vpop.f32.mrb[3].mxu1  ;;  %v2412_v11 = vld [vmem:[#allocation8 + $0x1f0] sm:$0xff]   ;;  %v1265_v17 = vrot.slane %v2665_v8, %v1214_v9 }
 0x166   :  { %v1283_v20 = vmul.f32 %v1249_v13, %v1233_v16  ;;  %v1215_v13 = vrot.slane %v2659_v6, %v1214_v9 }
 0x167   :  { %v1290_v21 = vmul.f32 %v1282_v18, %v1232_v14  ;;  %v1261_v14 = vrot.slane %v2665_v8, %v1210_v7  ;;  %v2414_v18 = vld [vmem:[#allocation8 + $0x1f8] sm:$0xff]  }
 0x168   :  { %v1291_v22 = vmul.f32 %v1283_v20, %v1233_v16 }
 0x169   :  { %v1298_v23 = vpack.c.bf16 %v1290_v21, %v1290_v21 }
 0x16a   :  { %v1299_v24 = vpack.c.bf16 %v1291_v22, %v1291_v22 }
 0x16c   :  { %1850 = vmatprep.mubr.bf16.mxu1 %v1299_v24 }
 0x16d   :  { %1851 = vmatmul.mubr.bf16.vlgmr.msra.gmra.mrb[8].mxu1 %v1298_v23 }
 0x16e   :  { %2284 = vmatpush3.bf16.msra.mxu1 %v2385_v25  ;;  %v2415_v25 = vld [vmem:[#allocation8 + $0x1b8] sm:$0xff]  }
 0x16f   :  { %2285 = vmatprep.subr.bf16.mxu1 %v2386_v41 }
 0x172   :  { %2286 = vmatpush3.bf16.msra.mxu1 %v2387_v26 }
 0x173   :  { %2287 = vmatprep.subr.bf16.mxu1 %v2388_v27 }
 0x176   :  { %2288 = vmatpush3.bf16.msra.mxu1 %v2389_v28 }
 0x177   :  { %2289 = vmatprep.subr.bf16.mxu1 %v2390_v29 }
 0x17a   :  { %2290 = vmatpush3.bf16.msra.mxu1 %v2391_v30  ;;  %v1218_v30 = vsub.s32 6, %v2653_v4 }
 0x17b   :  { %2291 = vmatprep.subr.bf16.mxu1 %v2392_v31  ;;  %v1222_v31 = vsub.s32 7, %v2653_v4 }
 0x17c   :  { %v1219_v32 = vrot.slane %v2659_v6, %v1218_v30  ;;  %v1269_v34 = vrot.slane %v2665_v8, %v1218_v30 }
 0x17e   :  { %2292 = vmatpush3.bf16.msra.mxu1 %v2393_v33  ;;  %v1223_v33 = vrot.slane %v2659_v6, %v1222_v31 }
 0x17f   :  { %2293 = vmatprep.subr.bf16.mxu1 %v2394_v35 }
 0x180   :  { %v1102_v42 = vpop.f32.mrb[4].mxu0 }
 0x181   :  { %v1234_v44 = vsub.f32 %v1203_v36, %v1102_v42  ;;  %v1104_v45 = vpop.f32.mrb[5].mxu0  ;;  %v1273_v36 = vrot.slane %v2665_v8, %v1222_v31 }
 0x182   :  { %2294 = vmatpush3.bf16.msra.mxu1 %v2395_v37  ;;  %v1235_v47 = vsub.f32 %v1207_v38, %v1104_v45  ;;  %v1106_v48 = vpop.f32.mrb[6].mxu0 }
 0x183   :  { %2295 = vmatprep.subr.bf16.mxu1 %v2396_v39  ;;  %v1284_v50 = vmul.f32 %v1253_v40, %v1234_v44  ;;  %v1107_v51 = vpop.f32.mrb[7].mxu0 }
 0x184   :  { %v1285_v52 = vmul.f32 %v1257_v43, %v1235_v47 }
 0x185   :  { %v1292_v53 = vmul.f32 %v1284_v50, %v1234_v44 }
 0x186   :  { %2296 = vmatpush3.bf16.msra.mxu1 %v2397_v46  ;;  %v1293_v54 = vmul.f32 %v1285_v52, %v1235_v47 }
 0x187   :  { %2297 = vmatprep.subr.bf16.mxu1 %v2398_v49  ;;  %v1300_v57 = vpack.c.bf16 %v1292_v53, %v1292_v53 }
 0x188   :  { %v1301_v55 = vpack.c.bf16 %v1293_v54, %v1293_v54 }
 0x18a   :  { %2298 = vmatpush3.bf16.msra.mxu1 %v2399_v62  ;;  %1890 = vmatprep.mubr.bf16.mxu0 %v1301_v55 }
 0x18b   :  { %1891 = vmatmul.mubr.bf16.vlgmr.msra.gmra.mrb[12].mxu0 %v1300_v57 }
 0x18c   :  { %2306 = vmatpush3.bf16.msra.mxu0 %v2401_v56 }
 0x18d   :  { %2307 = vmatprep.subr.bf16.mxu0 %v2402_v58 }
 0x190   :  { %2308 = vmatpush3.bf16.msra.mxu0 %v2403_v59 }
 0x191   :  { %2309 = vmatprep.subr.bf16.mxu0 %v2404_v60 }
 0x194   :  { %2310 = vmatpush3.bf16.msra.mxu0 %v2405_v61 }
 0x195   :  { %2311 = vmatprep.subr.bf16.mxu0 %v2406_v63  ;;  %v89_v63 = vpop.xlane.xlu0 %88 }
 0x198   :  { %2312 = vmatpush3.bf16.msra.mxu0 %v2407_v1  ;;  %v2216_v1 = vld [vmem:[%s2707_s2] ss:$0 sm:$0xff] }
 0x199   :  { %2313 = vmatprep.subr.bf16.mxu0 %v2408_v2  ;;  %v1986_v2 = vmul.f32 2.0, %v2651_v0 }
 0x19c   :  { %2314 = vmatpush3.bf16.msra.mxu0 %v2409_v3  ;;  %v1985_v3 = vadd.f32 %v2216_v1, %v89_v63 }
 0x19d   :  { %2315 = vmatprep.subr.bf16.mxu0 %v2410_v5 }
 0x1a0   :  { %2316 = vmatpush3.bf16.msra.mxu0 %v2411_v10 }
 0x1a1   :  { %2317 = vmatprep.subr.bf16.mxu0 %v2412_v11 }
 0x1a2   :  { %v1143_v16 = vpop.f32.mrb[4].mxu1 }
 0x1a3   :  { %v1236_v19 = vsub.f32 %v1211_v12, %v1143_v16  ;;  %v1145_v20 = vpop.f32.mrb[5].mxu1  ;;  %v1987_v12 = vsub.f32 %v1985_v3, %v1986_v2 }
 0x1a4   :  { %v1237_v21 = vsub.f32 %v1215_v13, %v1145_v20  ;;  %v1147_v22 = vpop.f32.mrb[6].mxu1  ;;  %2318 = vmatpush3.bf16.msra.mxu0 %v2413_v15 }
 0x1a5   :  { %v1286_v23 = vmul.f32 %v1261_v14, %v1236_v19  ;;  %v1148_v24 = vpop.f32.mrb[7].mxu1  ;;  %2319 = vmatprep.subr.bf16.mxu0 %v2414_v18 }
 0x1a6   :  { %v1287_v41 = vmul.f32 %v1265_v17, %v1237_v21 }
 0x1a7   :  { %v1294_v26 = vmul.f32 %v1286_v23, %v1236_v19 }
 0x1a8   :  { %v1295_v27 = vmul.f32 %v1287_v41, %v1237_v21  ;;  %2320 = vmatpush3.bf16.msra.mxu0 %v2415_v25 }
 0x1a9   :  { %v1302_v28 = vpack.c.bf16 %v1294_v26, %v1294_v26 }
 0x1aa   :  { %v1303_v29 = vpack.c.bf16 %v1295_v27, %v1295_v27 }
 0x1ac   :  { %1930 = vmatprep.mubr.bf16.mxu1 %v1303_v29 }
 0x1ad   :  { %1931 = vmatmul.mubr.bf16.vlgmr.msra.gmra.mrb[12].mxu1 %v1302_v28 }
 0x1c0   :  { %v1184_v35 = vpop.f32.mrb[8].mxu0 }
 0x1c1   :  { %v1238_v37 = vsub.f32 %v1219_v32, %v1184_v35  ;;  %v1186_v38 = vpop.f32.mrb[9].mxu0 }
 0x1c2   :  { %v1239_v39 = vsub.f32 %v1223_v33, %v1186_v38  ;;  %v1188_v40 = vpop.f32.mrb[10].mxu0 }
 0x1c3   :  { %v1288_v42 = vmul.f32 %v1269_v34, %v1238_v37  ;;  %v1189_v43 = vpop.f32.mrb[11].mxu0 }
 0x1c4   :  { %v1289_v44 = vmul.f32 %v1273_v36, %v1239_v39 }
 0x1c5   :  { %v1296_v45 = vmul.f32 %v1288_v42, %v1238_v37 }
 0x1c6   :  { %v1297_v46 = vmul.f32 %v1289_v44, %v1239_v39 }
 0x1c7   :  { %v1304_v4 = vpack.c.bf16 %v1296_v45, %v1296_v45 }
 0x1c8   :  { %v1305_v47 = vpack.c.bf16 %v1297_v46, %v1297_v46 }
 0x1ca   :  { %1970 = vmatprep.mubr.bf16.mxu0 %v1305_v47 }
 0x1cb   :  { %1971 = vmatmul.mubr.bf16.vlgmr.msra.gmra.mrb[16].mxu0 %v1304_v4 }
 0x240   :  { %v2255_v48 = vpop.f32.mrb[8].mxu1 }
 0x241   :  { %v2256_v6 = vpop.f32.mrb[9].mxu1 }
 0x242   :  { %v2257_v49 = vadd.f32 %v2256_v6, %v2255_v48  ;;  %v2258_v50 = vpop.f32.mrb[10].mxu1 }
 0x243   :  { %v2259_v51 = vpop.f32.mrb[11].mxu1 }
 0x25e   :  { %v2277_v52 = vpop.f32.mrb[12].mxu0 }
 0x25f   :  { %v2278_v8 = vpop.f32.mrb[13].mxu0 }
 0x260   :  { %v2279_v53 = vadd.f32 %v2278_v8, %v2277_v52  ;;  %v2280_v62 = vpop.f32.mrb[14].mxu0 }
 0x261   :  { %v2281_v54 = vpop.f32.mrb[15].mxu0 }
 0x262   :  { %v1893_v55 = vadd.f32 %v2279_v53, %v2257_v49 }
 0x280   :  { %v2299_v56 = vpop.f32.mrb[12].mxu1 }
 0x281   :  { %v2300_v57 = vpop.f32.mrb[13].mxu1 }
 0x282   :  { %v2301_v58 = vadd.f32 %v2300_v57, %v2299_v56  ;;  %v2302_v59 = vpop.f32.mrb[14].mxu1 }
 0x283   :  { %v2303_v60 = vpop.f32.mrb[15].mxu1 }
 0x284   :  { %v1933_v61 = vadd.f32 %v2301_v58, %v1893_v55 }
 0x29e   :  { %v2321_v5 = vpop.f32.mrb[16].mxu0 }
 0x29f   :  { %v2322_v7 = vpop.f32.mrb[17].mxu0 }
 0x2a0   :  { %v2323_v9 = vadd.f32 %v2322_v7, %v2321_v5  ;;  %v2324_v10 = vpop.f32.mrb[18].mxu0 }
 0x2a1   :  { %v2325_v11 = vpop.f32.mrb[19].mxu0 }
 0x2a2   :  { %v1973_v13 = vadd.f32 %v2323_v9, %v1933_v61 }
 0x2a4   :  { %v1988_v14 = vadd.f32 %v1987_v12, %v1973_v13 }
 0x2a6   :  { %v1989_v15 = vmax.f32 %v1988_v14, 0.0 }
 0x2a8   :  { %1990 = vst [vmem:[#allocation10] sm:$0xff] %v1989_v15 }
 0x2a9   :  { %2515 = shalt.err (!%p2512_p8)
}
 0x2aa   :  { %s2516_s10 = scalar_lea.hbm %s2712_s7, 128 }
 0x2ab   :  { %p2517_p9 = scmp.ne.s32.totalorder %s2712_s7, %s2516_s10  ;;  %p2520_p10 = scmp.lt.u32.totalorder %s2516_s10, %s2712_s7 }
 0x2ad   :  { %p2522_p11 = pnand %p2520_p10, %p2517_p9 }
 0x2af   :  { %2525 = shalt.err (!%p2522_p11)
}
 0x2b0   :  { %2000 = dma.vmem_to_hbm [thread:$0]  %s1998_s30, 128, %s2712_s7, [#allocation4]  }
 0x2b1   :  { %2532 = dma.done.wait [#allocation4], 128  }
 0x2b2   :  { %2533 = vsyncadd [#allocation4], 4294967168 }
 0x2b3   :  { %2004 = vsyncpa [#allocation3], 1 }
 0x2b4   :  { %2005 = vsyncpa [#allocation6], 1 }
 0x2b5   :  { %2006 = vsyncpa [#allocation9], 1 }
 0x2b6   :  { %2007 = vsyncpa [#allocation4], 1 }

</bundles_post_ra>
